<compile_context>
chip_gen: v7x
topology: tpu7x:2x2x1
jax: 0.10.0
libtpu: 0.0.40
codegen_flags: <defaults>
</compile_context>

<pallas_src>
import jax
import jax.numpy as jnp
from jax.experimental import pallas as pl
from jax.experimental.pallas import tpu as pltpu

_LANE = 128
_SUBLANE = 8
_MAX_TILE_ROWS = 256          # 256*128 px/channel/tile -> 7*256*128*4B ~= 896 KiB per input block
_FOCAL_ALPHA = 0.25
_FOCAL_EPS = 1e-5
_SL1_BETA = 1.0               # PyTorch smooth_l1_loss default


def _multitask_loss_kernel(p_ref, t_ref, cls_ref, loc_ref, pos_ref,
                           acc_cls, acc_loc, acc_pos):
    step = pl.program_id(1)

    @pl.when(step == 0)
    def _():
        acc_cls[...] = jnp.zeros_like(acc_cls)
        acc_loc[...] = jnp.zeros_like(acc_loc)
        acc_pos[...] = jnp.zeros_like(acc_pos)

    p = p_ref[...]            # (7, TR, 128) f32
    tg = t_ref[...]

    x = p[0]                  # cls predictions (TR, 128)
    y = tg[0]                 # cls targets     (TR, 128)

    # ---- binary focal loss: -alpha_t * (1 - x_t)^2 * log(x_t + eps) ----
    two_y_m1 = 2.0 * y - 1.0
    one_m_y = 1.0 - y
    x_t = x * two_y_m1 + one_m_y
    alpha_t = _FOCAL_ALPHA * two_y_m1 + one_m_y
    q = 1.0 - x_t
    acc_cls[...] += (-alpha_t) * (q * q) * jnp.log(x_t + _FOCAL_EPS)

    # ---- positive (nonzero) cls-target count ----
    acc_pos[...] += (y != 0.0).astype(jnp.float32)

    # ---- masked smooth-L1 over the 6 loc channels (leading dim -> VALU) ----
    lp = p[1:]                # (6, TR, 128)
    lt = tg[1:]
    d = y[None, :, :] * lp - lt
    ad = jnp.abs(d)
    sl1 = jnp.where(ad < _SL1_BETA,
                    (0.5 / _SL1_BETA) * d * d,
                    ad - 0.5 * _SL1_BETA)
    acc_loc[...] += jnp.sum(sl1, axis=0)   # 5 element-wise adds, no XLU

    @pl.when(step == pl.num_programs(1) - 1)
    def _():
        cls_ref[...] = jnp.sum(acc_cls[...]).reshape(1, 1)
        loc_ref[...] = jnp.sum(acc_loc[...]).reshape(1, 1)
        pos_ref[...] = jnp.sum(acc_pos[...]).reshape(1, 1)


def _channel_major(x, n_pixels, r_pad):
    """[B, H, W, C] -> zero-padded channel-major [C, r_pad, 128]."""
    c = x.shape[-1]
    flat = x.reshape(n_pixels, c).astype(jnp.float32)
    pad = r_pad * _LANE - n_pixels
    if pad:
        flat = jnp.pad(flat, ((0, pad), (0, 0)))   # zero pads contribute 0 to all sums
    return flat.T.reshape(c, r_pad, _LANE)


def _reduce_sums(preds, targets):
    """Returns (cls_loss_sum, loc_loss_sum, positive_count) scalars via Pallas."""
    B, H, W, C = preds.shape
    n = B * H * W
    rows = (n + _LANE - 1) // _LANE
    rows = ((rows + _SUBLANE - 1) // _SUBLANE) * _SUBLANE   # sublane-align

    if rows <= _MAX_TILE_ROWS:
        tile_rows = int(rows)
        n_chunks, tiles_per_chunk = 1, 1
    else:
        tile_rows = _MAX_TILE_ROWS
        total_tiles = (rows + tile_rows - 1) // tile_rows
        n_chunks = 2 if total_tiles >= 2 else 1      # v7x megacore parallel axis
        tiles_per_chunk = (total_tiles + n_chunks - 1) // n_chunks
    r_pad = n_chunks * tiles_per_chunk * tile_rows

    p = _channel_major(preds, n, r_pad)
    t = _channel_major(targets, n, r_pad)

    tpc = tiles_per_chunk
    in_spec = pl.BlockSpec((C, tile_rows, _LANE),
                           lambda c, i: (0, c * tpc + i, 0))
    out_spec = pl.BlockSpec((1, 1), lambda c, i: (c, 0))

    cls_s, loc_s, pos_s = pl.pallas_call(
        _multitask_loss_kernel,
        out_shape=(
            jax.ShapeDtypeStruct((n_chunks, 1), jnp.float32),
            jax.ShapeDtypeStruct((n_chunks, 1), jnp.float32),
            jax.ShapeDtypeStruct((n_chunks, 1), jnp.float32),
        ),
        grid_spec=pltpu.PrefetchScalarGridSpec(
            num_scalar_prefetch=0,
            grid=(n_chunks, tiles_per_chunk),
            in_specs=[in_spec, in_spec],
            out_specs=[out_spec, out_spec, out_spec],
            scratch_shapes=[pltpu.VMEM((tile_rows, _LANE), jnp.float32)] * 3,
        ),
        compiler_params=pltpu.CompilerParams(
            dimension_semantics=("parallel", "arbitrary"),
            vmem_limit_bytes=32 * 1024 * 1024),
    )(p, t)

    return jnp.sum(cls_s), jnp.sum(loc_s), jnp.sum(pos_s)


def multi_task_loss(preds, targets, sigma=None):
    """Pallas implementation of MultiTaskLoss.forward.

    preds, targets: [B, H, W, 7] (channel 0 = cls, channels 1..6 = loc).
    Returns (final_loss, loc_loss, cls_loss) scalars, matching the PyTorch module.
    """
    B, H, W, _ = targets.shape
    if sigma is None:
        sigma = jnp.ones((2,), jnp.float32) / 2.0   # nn.Parameter(torch.ones(2)/2)
    denom = jnp.float32(B * H * W)

    cls_sum, loc_sum, pos_cnt = _reduce_sums(preds, targets)
    cls_loss = cls_sum / denom
    # TODO(synk): PyTorch skips loc loss entirely when there are no positives;
    # here the data-dependent branch is lowered to a jnp.where select.
    loc_loss = jnp.where(pos_cnt > 0.0, loc_sum / denom, jnp.float32(0.0))

    s2 = sigma.astype(jnp.float32) ** 2
    final_loss = jnp.sum(1.0 / (2.0 * s2) * jnp.stack([cls_loss, loc_loss])
                         + 0.5 * jnp.log(s2 + 1.0))
    return final_loss, loc_loss, cls_loss


def _reference(preds, targets, sigma):
    """Pure-JAX reference mirroring the PyTorch MultiTaskLoss forward."""
    preds = preds.astype(jnp.float32)
    targets = targets.astype(jnp.float32)
    cls_p, loc_p = preds[..., 0], preds[..., 1:]
    cls_t, loc_t = targets[..., 0], targets[..., 1:]
    B, H, W = cls_t.shape

    x_t = cls_p * (2.0 * cls_t - 1.0) + (1.0 - cls_t)
    alpha_t = _FOCAL_ALPHA * (2.0 * cls_t - 1.0) + (1.0 - cls_t)
    fl = -alpha_t * (1.0 - x_t) ** 2 * jnp.log(x_t + _FOCAL_EPS)
    cls_loss = jnp.sum(fl) / (B * H * W)

    pos = jnp.sum(cls_t != 0.0)
    loc_sum = jnp.float32(0.0)
    for i in range(loc_t.shape[-1]):
        d = cls_t * loc_p[..., i] - loc_t[..., i]
        ad = jnp.abs(d)
        loc_sum += jnp.sum(jnp.where(ad < 1.0, 0.5 * d * d, ad - 0.5))
    loc_loss = jnp.where(pos > 0, loc_sum / (B * H * W), 0.0)

    s2 = sigma ** 2
    final = jnp.sum(1.0 / (2.0 * s2) * jnp.stack([cls_loss, loc_loss])
                    + 0.5 * jnp.log(s2 + 1.0))
    return final, loc_loss, cls_loss


if __name__ == "__main__":
    key = jax.random.PRNGKey(0)
    k1, k2, k3, k4 = jax.random.split(key, 4)

    B, H, W = 2, 16, 16
    cls_p = jax.nn.sigmoid(jax.random.normal(k1, (B, H, W, 1), jnp.float32))
    loc_p = jax.random.normal(k2, (B, H, W, 6), jnp.float32)
    preds = jnp.concatenate([cls_p, loc_p], axis=-1)

    cls_t = (jax.random.uniform(k3, (B, H, W, 1)) < 0.3).astype(jnp.float32)
    loc_t = jax.random.normal(k4, (B, H, W, 6), jnp.float32)
    targets = jnp.concatenate([cls_t, loc_t], axis=-1)

    out = multi_task_loss(preds, targets)
    out = jax.block_until_ready(out)

    sigma = jnp.ones((2,), jnp.float32) / 2.0
    ref = _reference(preds, targets, sigma)

    for got, want in zip(out, ref):
        assert jnp.allclose(got, want, rtol=1e-4, atol=1e-5), (got, want)

    print("KERNEL_OK")
</pallas_src>

<mosaic_0001>
module attributes {stable_mosaic.version = 11 : i64} {
  func.func @_multitask_loss_kernel(%arg0: i32, %arg1: i32, %arg2: memref<7x8x128xf32, #tpu.memory_space<vmem>>, %arg3: memref<7x8x128xf32, #tpu.memory_space<vmem>>, %arg4: memref<1x1xf32, #tpu.memory_space<vmem>>, %arg5: memref<1x1xf32, #tpu.memory_space<vmem>>, %arg6: memref<1x1xf32, #tpu.memory_space<vmem>>, %arg7: memref<8x128xf32, #tpu.memory_space<vmem>>, %arg8: memref<8x128xf32, #tpu.memory_space<vmem>>, %arg9: memref<8x128xf32, #tpu.memory_space<vmem>>) attributes {dimension_semantics = [#tpu.dimension_semantics<parallel>, #tpu.dimension_semantics<arbitrary>], iteration_bounds = array<i64: 1, 1>, scalar_prefetch = 0 : i64, scratch_operands = 3 : i64, tpu.core_type = #tpu.core_type<tc>, window_params = [{transform_indices = @transform_0, window_bounds = array<i64: 7, 8, 128>}, {transform_indices = @transform_1, window_bounds = array<i64: 7, 8, 128>}, {transform_indices = @transform_2, window_bounds = array<i64: 1, 1>}, {transform_indices = @transform_3, window_bounds = array<i64: 1, 1>}, {transform_indices = @transform_4, window_bounds = array<i64: 1, 1>}]} {
    %c0_i32 = arith.constant 0 : i32
    %0 = arith.cmpi eq, %arg1, %c0_i32 : i32
    %1 = arith.extui %0 : i1 to i32
    %c0_i32_0 = arith.constant 0 : i32
    %2 = arith.cmpi ne, %1, %c0_i32_0 : i32
    scf.if %2 {
      %cst_31 = arith.constant 0.000000e+00 : f32
      %62 = vector.broadcast %cst_31 : f32 to vector<8x128xf32>
      %c0_32 = arith.constant 0 : index
      %c0_33 = arith.constant 0 : index
      %63 = vector.load %arg7[%c0_32, %c0_33] : memref<8x128xf32, #tpu.memory_space<vmem>>, vector<8x128xf32>
      tpu.vector_store %arg7[%c0_32, %c0_33], %62 {strides = array<i32>} : memref<8x128xf32, #tpu.memory_space<vmem>>, vector<8x128xf32>,
      %cst_34 = arith.constant 0.000000e+00 : f32
      %64 = vector.broadcast %cst_34 : f32 to vector<8x128xf32>
      %c0_35 = arith.constant 0 : index
      %c0_36 = arith.constant 0 : index
      %65 = vector.load %arg8[%c0_35, %c0_36] : memref<8x128xf32, #tpu.memory_space<vmem>>, vector<8x128xf32>
      tpu.vector_store %arg8[%c0_35, %c0_36], %64 {strides = array<i32>} : memref<8x128xf32, #tpu.memory_space<vmem>>, vector<8x128xf32>,
      %cst_37 = arith.constant 0.000000e+00 : f32
      %66 = vector.broadcast %cst_37 : f32 to vector<8x128xf32>
      %c0_38 = arith.constant 0 : index
      %c0_39 = arith.constant 0 : index
      %67 = vector.load %arg9[%c0_38, %c0_39] : memref<8x128xf32, #tpu.memory_space<vmem>>, vector<8x128xf32>
      tpu.vector_store %arg9[%c0_38, %c0_39], %66 {strides = array<i32>} : memref<8x128xf32, #tpu.memory_space<vmem>>, vector<8x128xf32>,
    } else {
    }
    %c0 = arith.constant 0 : index
    %c0_1 = arith.constant 0 : index
    %c0_2 = arith.constant 0 : index
    %3 = vector.load %arg2[%c0, %c0_1, %c0_2] : memref<7x8x128xf32, #tpu.memory_space<vmem>>, vector<7x8x128xf32>
    %c0_3 = arith.constant 0 : index
    %c0_4 = arith.constant 0 : index
    %c0_5 = arith.constant 0 : index
    %4 = vector.load %arg3[%c0_3, %c0_4, %c0_5] : memref<7x8x128xf32, #tpu.memory_space<vmem>>, vector<7x8x128xf32>
    %5 = vector.extract_strided_slice %3 {offsets = [0, 0, 0], sizes = [1, 8, 128], strides = [1, 1, 1]} : vector<7x8x128xf32> to vector<1x8x128xf32>
    %6 = vector.shape_cast %5 : vector<1x8x128xf32> to vector<8x128xf32>
    %7 = vector.extract_strided_slice %4 {offsets = [0, 0, 0], sizes = [1, 8, 128], strides = [1, 1, 1]} : vector<7x8x128xf32> to vector<1x8x128xf32>
    %8 = vector.shape_cast %7 : vector<1x8x128xf32> to vector<8x128xf32>
    %cst = arith.constant 2.000000e+00 : f32
    %9 = vector.broadcast %cst : f32 to vector<8x128xf32>
    %10 = arith.mulf %9, %8 : vector<8x128xf32>
    %cst_6 = arith.constant 1.000000e+00 : f32
    %11 = vector.broadcast %cst_6 : f32 to vector<8x128xf32>
    %12 = arith.subf %10, %11 : vector<8x128xf32>
    %cst_7 = arith.constant 1.000000e+00 : f32
    %13 = vector.broadcast %cst_7 : f32 to vector<8x128xf32>
    %14 = arith.subf %13, %8 : vector<8x128xf32>
    %15 = arith.mulf %6, %12 : vector<8x128xf32>
    %16 = arith.addf %15, %14 : vector<8x128xf32>
    %cst_8 = arith.constant 2.500000e-01 : f32
    %17 = vector.broadcast %cst_8 : f32 to vector<8x128xf32>
    %18 = arith.mulf %17, %12 : vector<8x128xf32>
    %19 = arith.addf %18, %14 : vector<8x128xf32>
    %cst_9 = arith.constant 1.000000e+00 : f32
    %20 = vector.broadcast %cst_9 : f32 to vector<8x128xf32>
    %21 = arith.subf %20, %16 : vector<8x128xf32>
    %c0_10 = arith.constant 0 : index
    %c0_11 = arith.constant 0 : index
    %22 = vector.load %arg7[%c0_10, %c0_11] : memref<8x128xf32, #tpu.memory_space<vmem>>, vector<8x128xf32>
    %cst_12 = arith.constant 0.000000e+00 : f32
    %23 = vector.broadcast %cst_12 : f32 to vector<8x128xf32>
    %24 = arith.subf %23, %19 : vector<8x128xf32>
    %25 = arith.mulf %21, %21 : vector<8x128xf32>
    %26 = arith.mulf %24, %25 : vector<8x128xf32>
    %cst_13 = arith.constant 9.99999974E-6 : f32
    %27 = vector.broadcast %cst_13 : f32 to vector<8x128xf32>
    %28 = arith.addf %16, %27 : vector<8x128xf32>
    %29 = math.log %28 : vector<8x128xf32>
    %30 = arith.mulf %26, %29 : vector<8x128xf32>
    %31 = arith.addf %22, %30 : vector<8x128xf32>
    %c0_14 = arith.constant 0 : index
    %c0_15 = arith.constant 0 : index
    %32 = vector.load %arg7[%c0_14, %c0_15] : memref<8x128xf32, #tpu.memory_space<vmem>>, vector<8x128xf32>
    tpu.vector_store %arg7[%c0_14, %c0_15], %31 {strides = array<i32>} : memref<8x128xf32, #tpu.memory_space<vmem>>, vector<8x128xf32>,
    %c0_16 = arith.constant 0 : index
    %c0_17 = arith.constant 0 : index
    %33 = vector.load %arg9[%c0_16, %c0_17] : memref<8x128xf32, #tpu.memory_space<vmem>>, vector<8x128xf32>
    %cst_18 = arith.constant 0.000000e+00 : f32
    %34 = vector.broadcast %cst_18 : f32 to vector<8x128xf32>
    %35 = arith.cmpf one, %8, %34 : vector<8x128xf32>
    %36 = arith.extui %35 : vector<8x128xi1> to vector<8x128xi32>
    %37 = arith.sitofp %36 : vector<8x128xi32> to vector<8x128xf32>
    %38 = arith.addf %33, %37 : vector<8x128xf32>
    %c0_19 = arith.constant 0 : index
    %c0_20 = arith.constant 0 : index
    %39 = vector.load %arg9[%c0_19, %c0_20] : memref<8x128xf32, #tpu.memory_space<vmem>>, vector<8x128xf32>
    tpu.vector_store %arg9[%c0_19, %c0_20], %38 {strides = array<i32>} : memref<8x128xf32, #tpu.memory_space<vmem>>, vector<8x128xf32>,
    %40 = vector.extract_strided_slice %3 {offsets = [1, 0, 0], sizes = [6, 8, 128], strides = [1, 1, 1]} : vector<7x8x128xf32> to vector<6x8x128xf32>
    %41 = vector.extract_strided_slice %4 {offsets = [1, 0, 0], sizes = [6, 8, 128], strides = [1, 1, 1]} : vector<7x8x128xf32> to vector<6x8x128xf32>
    %42 = vector.shape_cast %8 : vector<8x128xf32> to vector<1x8x128xf32>
    %43 = vector.broadcast %42 : vector<1x8x128xf32> to vector<6x8x128xf32>
    %44 = arith.mulf %43, %40 : vector<6x8x128xf32>
    %45 = arith.subf %44, %41 : vector<6x8x128xf32>
    %46 = math.absf %45 : vector<6x8x128xf32>
    %cst_21 = arith.constant 1.000000e+00 : f32
    %47 = vector.broadcast %cst_21 : f32 to vector<6x8x128xf32>
    %48 = arith.cmpf olt, %46, %47 : vector<6x8x128xf32>
    %cst_22 = arith.constant 5.000000e-01 : f32
    %49 = vector.broadcast %cst_22 : f32 to vector<6x8x128xf32>
    %50 = arith.mulf %49, %45 : vector<6x8x128xf32>
    %51 = arith.mulf %50, %45 : vector<6x8x128xf32>
    %cst_23 = arith.constant 5.000000e-01 : f32
    %52 = vector.broadcast %cst_23 : f32 to vector<6x8x128xf32>
    %53 = arith.subf %46, %52 : vector<6x8x128xf32>
    %54 = arith.select %48, %51, %53 : vector<6x8x128xi1>, vector<6x8x128xf32>
    %c0_24 = arith.constant 0 : index
    %c0_25 = arith.constant 0 : index
    %55 = vector.load %arg8[%c0_24, %c0_25] : memref<8x128xf32, #tpu.memory_space<vmem>>, vector<8x128xf32>
    %cst_26 = arith.constant dense<0.000000e+00> : vector<8x128xf32>
    %56 = vector.multi_reduction <add>, %54, %cst_26 [0] : vector<6x8x128xf32> to vector<8x128xf32>
    %57 = arith.addf %55, %56 : vector<8x128xf32>
    %c0_27 = arith.constant 0 : index
    %c0_28 = arith.constant 0 : index
    %58 = vector.load %arg8[%c0_27, %c0_28] : memref<8x128xf32, #tpu.memory_space<vmem>>, vector<8x128xf32>
    tpu.vector_store %arg8[%c0_27, %c0_28], %57 {strides = array<i32>} : memref<8x128xf32, #tpu.memory_space<vmem>>, vector<8x128xf32>,
    %c0_i32_29 = arith.constant 0 : i32
    %59 = arith.cmpi eq, %arg1, %c0_i32_29 : i32
    %60 = arith.extui %59 : i1 to i32
    %c0_i32_30 = arith.constant 0 : i32
    %61 = arith.cmpi ne, %60, %c0_i32_30 : i32
    scf.if %61 {
      %c0_31 = arith.constant 0 : index
      %c0_32 = arith.constant 0 : index
      %62 = vector.load %arg7[%c0_31, %c0_32] : memref<8x128xf32, #tpu.memory_space<vmem>>, vector<8x128xf32>
      %63 = vector.shape_cast %62 : vector<8x128xf32> to vector<1x8x128xf32>
      %cst_33 = arith.constant dense<0.000000e+00> : vector<1xf32>
      %64 = vector.multi_reduction <add>, %63, %cst_33 [1, 2] : vector<1x8x128xf32> to vector<1xf32>
      %65 = vector.shape_cast %64 : vector<1xf32> to vector<1x1x1xf32>
      %66 = vector.extract %65[0, 0, 0] : f32 from vector<1x1x1xf32>
      %67 = vector.broadcast %66 : f32 to vector<1x1xf32>
      %c0_34 = arith.constant 0 : index
      %c0_35 = arith.constant 0 : index
      %68 = vector.load %arg4[%c0_34, %c0_35] : memref<1x1xf32, #tpu.memory_space<vmem>>, vector<1x1xf32>
      tpu.vector_store %arg4[%c0_34, %c0_35], %67 {strides = array<i32>} : memref<1x1xf32, #tpu.memory_space<vmem>>, vector<1x1xf32>,
      %c0_36 = arith.constant 0 : index
      %c0_37 = arith.constant 0 : index
      %69 = vector.load %arg8[%c0_36, %c0_37] : memref<8x128xf32, #tpu.memory_space<vmem>>, vector<8x128xf32>
      %70 = vector.shape_cast %69 : vector<8x128xf32> to vector<1x8x128xf32>
      %cst_38 = arith.constant dense<0.000000e+00> : vector<1xf32>
      %71 = vector.multi_reduction <add>, %70, %cst_38 [1, 2] : vector<1x8x128xf32> to vector<1xf32>
      %72 = vector.shape_cast %71 : vector<1xf32> to vector<1x1x1xf32>
      %73 = vector.extract %72[0, 0, 0] : f32 from vector<1x1x1xf32>
      %74 = vector.broadcast %73 : f32 to vector<1x1xf32>
      %c0_39 = arith.constant 0 : index
      %c0_40 = arith.constant 0 : index
      %75 = vector.load %arg5[%c0_39, %c0_40] : memref<1x1xf32, #tpu.memory_space<vmem>>, vector<1x1xf32>
      tpu.vector_store %arg5[%c0_39, %c0_40], %74 {strides = array<i32>} : memref<1x1xf32, #tpu.memory_space<vmem>>, vector<1x1xf32>,
      %c0_41 = arith.constant 0 : index
      %c0_42 = arith.constant 0 : index
      %76 = vector.load %arg9[%c0_41, %c0_42] : memref<8x128xf32, #tpu.memory_space<vmem>>, vector<8x128xf32>
      %77 = vector.shape_cast %76 : vector<8x128xf32> to vector<1x8x128xf32>
      %cst_43 = arith.constant dense<0.000000e+00> : vector<1xf32>
      %78 = vector.multi_reduction <add>, %77, %cst_43 [1, 2] : vector<1x8x128xf32> to vector<1xf32>
      %79 = vector.shape_cast %78 : vector<1xf32> to vector<1x1x1xf32>
      %80 = vector.extract %79[0, 0, 0] : f32 from vector<1x1x1xf32>
      %81 = vector.broadcast %80 : f32 to vector<1x1xf32>
      %c0_44 = arith.constant 0 : index
      %c0_45 = arith.constant 0 : index
      %82 = vector.load %arg6[%c0_44, %c0_45] : memref<1x1xf32, #tpu.memory_space<vmem>>, vector<1x1xf32>
      tpu.vector_store %arg6[%c0_44, %c0_45], %81 {strides = array<i32>} : memref<1x1xf32, #tpu.memory_space<vmem>>, vector<1x1xf32>,
    } else {
    }
    return
  }
  func.func @transform_0(%arg0: i32, %arg1: i32) -> (i32, i32, i32) {
    %c1_i32 = arith.constant 1 : i32
    %0 = arith.muli %arg0, %c1_i32 : i32
    %1 = arith.addi %0, %arg1 : i32
    %c0_i32 = arith.constant 0 : i32
    %c0_i32_0 = arith.constant 0 : i32
    %c0_i32_1 = arith.constant 0 : i32
    return %c0_i32, %1, %c0_i32_0 : i32, i32, i32
  }
  func.func @transform_1(%arg0: i32, %arg1: i32) -> (i32, i32, i32) {
    %c1_i32 = arith.constant 1 : i32
    %0 = arith.muli %arg0, %c1_i32 : i32
    %1 = arith.addi %0, %arg1 : i32
    %c0_i32 = arith.constant 0 : i32
    %c0_i32_0 = arith.constant 0 : i32
    %c0_i32_1 = arith.constant 0 : i32
    return %c0_i32, %1, %c0_i32_0 : i32, i32, i32
  }
  func.func @transform_2(%arg0: i32, %arg1: i32) -> (i32, i32) {
    %c0_i32 = arith.constant 0 : i32
    %c0_i32_0 = arith.constant 0 : i32
    return %arg0, %c0_i32 : i32, i32
  }
  func.func @transform_3(%arg0: i32, %arg1: i32) -> (i32, i32) {
    %c0_i32 = arith.constant 0 : i32
    %c0_i32_0 = arith.constant 0 : i32
    return %arg0, %c0_i32 : i32, i32
  }
  func.func @transform_4(%arg0: i32, %arg1: i32) -> (i32, i32) {
    %c0_i32 = arith.constant 0 : i32
    %c0_i32_0 = arith.constant 0 : i32
    return %arg0, %c0_i32 : i32, i32
  }
}

</mosaic_0001>

<bundles_post_ra>
// kernel: tpu_custom_call.1
= control target key start
LH: loop header
LB: loop body
LE: loop exit
PB: predicated region body
PF: predicated region fallthrough
CT: control target
= control target key end

     0   :  { %10 = vsyncpa [#allocation6], 0  ;;  %s506_s0 = inlined_call_operand.hbm [shape: f32[7,8,128], index: 0, kind: input, shape index: {}]   ;;  %s507_s1 = inlined_call_operand.hbm [shape: f32[7,8,128], index: 1, kind: input, shape index: {}]   ;;  %s508_s2 = inlined_call_operand.hbm [shape: f32[1,1], index: 2, kind: output, shape index: {0}]   ;;  %s509_s3 = inlined_call_operand.hbm [shape: f32[1,1], index: 3, kind: output, shape index: {1}]   ;;  %s510_s4 = inlined_call_operand.hbm [shape: f32[1,1], index: 4, kind: output, shape index: {2}]  }
   0x1   :  { %11 = vsyncpa [#allocation9], 0 }
   0x2   :  { %12 = vsyncpa [#allocation7], 0 }
   0x3   :  { %13 = vsyncpa [#allocation12], 0  ;;  %s378_s15 = smov [#allocation5]   ;;  %s260_s19 = scalar_lea.hbm %s506_s0, 896 }
   0x4   :  { %s22_s16 = sshll.u32 %s378_s15, 4  ;;  %p261_p0 = scmp.ne.s32.totalorder %s506_s0, %s260_s19  ;;  %s23_s16 = int_to_ptr.vmem [resolvable:$true] %s22_s16 }
   0x5   :  { %p264_p1 = scmp.lt.u32.totalorder %s260_s19, %s506_s0 }
   0x7   :  { %p266_p2 = pnand %p264_p1, %p261_p0 }
   0x9   :  { %269 = shalt.err (!%p266_p2)
}
   0xa   :  { %s270_s24 = scalar_lea.vmem %s23_s16, 896  ;;  %p275_p4 = scmp.lt.s32.totalorder %s23_s16, %s23_s16 }
   0xb   :  { %p271_p3 = scmp.ne.s32.totalorder %s23_s16, %s270_s24  ;;  %p276_p5 = scmp.lt.s32.totalorder %s270_s24, %s270_s24 }
   0xd   :  { %p277_p6 = por %p276_p5, %p275_p4 }
   0xf   :  { %p278_p7 = pnand %p277_p6, %p271_p3 }
  0x11   :  { %281 = shalt.err (!%p278_p7)
}
  0x12   :  { %s379_s25 = smov 128   ;;  %s380_s26 = smov 8  }
  0x13   :  { %28 = dma.hbm_to_vmem [thread:$0]  %s506_s0, 896, %s23_s16, [#allocation6], %s379_s25, %s379_s25, %s380_s26  }
  0x14   :  { %s381_s29 = smov [#allocation8]   ;;  %s282_s7 = scalar_lea.hbm %s507_s1, 896 }
  0x15   :  { %s37_s30 = sshll.u32 %s381_s29, 4  ;;  %p283_p8 = scmp.ne.s32.totalorder %s507_s1, %s282_s7  ;;  %s38_s30 = int_to_ptr.vmem [resolvable:$true] %s37_s30 }
  0x16   :  { %p286_p9 = scmp.lt.u32.totalorder %s282_s7, %s507_s1 }
  0x18   :  { %p288_p10 = pnand %p286_p9, %p283_p8 }
  0x1a   :  { %291 = shalt.err (!%p288_p10)
}
  0x1b   :  { %s292_s12 = scalar_lea.vmem %s38_s30, 896  ;;  %p297_p12 = scmp.lt.s32.totalorder %s38_s30, %s38_s30 }
  0x1c   :  { %p293_p11 = scmp.ne.s32.totalorder %s38_s30, %s292_s12  ;;  %p298_p13 = scmp.lt.s32.totalorder %s292_s12, %s292_s12 }
  0x1e   :  { %p299_p0 = por %p298_p13, %p297_p12 }
  0x20   :  { %p300_p1 = pnand %p299_p0, %p293_p11 }
  0x22   :  { %303 = shalt.err (!%p300_p1)
}
  0x23   :  { %43 = dma.hbm_to_vmem [thread:$0]  %s507_s1, 896, %s38_s30, [#allocation9], %s379_s25, %s379_s25, %s380_s26  }
  0x24   :  { %370 = dma.done.wait [#allocation6], 896  }
  0x25   :  { %371 = vsyncadd [#allocation6], 4294966400 }
  0x26   :  { %372 = dma.done.wait [#allocation9], 896  }
  0x27   :  { %373 = vsyncadd [#allocation9], 4294966400  ;;  %v66_v0 = vld [vmem:[#allocation8] sm:$0xff]  ;;  %v59_v1 = vld [vmem:[#allocation5] sm:$0xff]  ;;  %v382_v9 = vmov 0.0   ;;  %s383_s1 = smov [#allocation10]  }
  0x28   :  { %v60_v2 = vld [vmem:[#allocation5 + $0x8] sm:$0xff]  ;;  %vm92_vm0 = vcmp.ne.f32.partialorder %v66_v0, 0.0  ;;  %v73_v3 = vmul.f32 2.0, %v66_v0  ;;  %v75_v4 = vsub.f32 1.0, %v66_v0  ;;  %v61_v5 = vld [vmem:[#allocation5 + $0x10] sm:$0xff]  ;;  %v62_v6 = vld [vmem:[#allocation5 + $0x18] sm:$0xff] }
  0x29   :  { %v63_v7 = vld [vmem:[#allocation5 + $0x20] sm:$0xff]  ;;  %v97_v8 = vmul.f32 %v66_v0, %v60_v2  ;;  %v237_v10 = vsel %vm92_vm0, 1.0, %v382_v9  ;;  %v64_v11 = vld [vmem:[#allocation5 + $0x28] sm:$0xff]  ;;  %v65_v12 = vld [vmem:[#allocation5 + $0x30] sm:$0xff]  ;;  %v98_v14 = vmul.f32 %v66_v0, %v61_v5  ;;  %v99_v15 = vmul.f32 %v66_v0, %v62_v6  ;;  %s199_s14 = sshll.u32 %s383_s1, 4  ;;  %s384_s16 = smov [#allocation11]   ;;  %s200_s14 = int_to_ptr.vmem [resolvable:$true] %s199_s14 }
  0x2a   :  { %v67_v13 = vld [vmem:[#allocation8 + $0x8] sm:$0xff]  ;;  %v100_v16 = vmul.f32 %v66_v0, %v63_v7  ;;  %182 = vadd.xlane.f32.xlu1 %v237_v10  ;;  %v236_v17 = vadd.f32 -1.0, %v73_v3  ;;  %v68_v18 = vld [vmem:[#allocation8 + $0x10] sm:$0xff]  ;;  %v69_v19 = vld [vmem:[#allocation8 + $0x18] sm:$0xff]  ;;  %v101_v21 = vmul.f32 %v66_v0, %v64_v11  ;;  %v102_v22 = vmul.f32 %v66_v0, %v65_v12  ;;  %s209_s17 = sshll.u32 %s384_s16, 4  ;;  %s385_s18 = smov [#allocation13]   ;;  %s210_s17 = int_to_ptr.vmem [resolvable:$true] %s209_s17 }
  0x2b   :  { %v70_v20 = vld [vmem:[#allocation8 + $0x20] sm:$0xff]  ;;  %v103_v23 = vsub.f32 %v97_v8, %v67_v13  ;;  %v71_v24 = vld [vmem:[#allocation8 + $0x28] sm:$0xff]  ;;  %v72_v25 = vld [vmem:[#allocation8 + $0x30] sm:$0xff]  ;;  %v104_v26 = vsub.f32 %v98_v14, %v68_v18  ;;  %v105_v27 = vsub.f32 %v99_v15, %v69_v19  ;;  %vm167_vm7 = vcmask 0   ;;  %s219_s19 = sshll.u32 %s385_s18, 4  ;;  %s304_s20 = scalar_lea.vmem %s200_s14, 16  ;;  %s472_s19 = int_to_ptr.vmem [resolvable:$true] %s219_s19 }
  0x2c   :  { %v76_v28 = vmul.f32 %v236_v17, %v59_v1  ;;  %v78_v29 = vmul.f32 0.25, %v236_v17  ;;  %v106_v30 = vsub.f32 %v100_v16, %v70_v20  ;;  %v107_v31 = vsub.f32 %v101_v21, %v71_v24  ;;  %p305_p2 = scmp.ne.s32.totalorder %s200_s14, %s304_s20  ;;  %s308_s21 = scalar_lea.vmem %s200_s14, 32 }
  0x2d   :  { %v108_v32 = vsub.f32 %v102_v22, %v72_v25  ;;  %v109_v33 = vand.u32 2147483647, %v103_v23  ;;  %v110_v35 = vand.u32 2147483647, %v104_v26  ;;  %v111_v36 = vand.u32 2147483647, %v105_v27  ;;  %p309_p3 = scmp.lt.s32.totalorder %s200_s14, %s200_s14  ;;  %p310_p4 = scmp.lt.s32.totalorder %s308_s21, %s304_s20 }
  0x2e   :  { %v77_v34 = vadd.f32 %v76_v28, %v75_v4  ;;  %v79_v37 = vadd.f32 %v78_v29, %v75_v4  ;;  %v112_v39 = vand.u32 2147483647, %v106_v30  ;;  %v113_v40 = vand.u32 2147483647, %v107_v31 }
  0x2f   :  { %v114_v41 = vand.u32 2147483647, %v108_v32  ;;  %vm435_vm1 = vcmp.lt.f32.partialorder %v109_v33, 1.0  ;;  %v121_v43 = vmul.f32 0.5, %v103_v23  ;;  %v122_v44 = vmul.f32 0.5, %v104_v26  ;;  %p311_p5 = por %p310_p4, %p309_p3 }
  0x30   :  { %v85_v38 = vadd.f32 1e-05, %v77_v34  ;;  %v80_v45 = vsub.f32 1.0, %v77_v34  ;;  %v123_v46 = vmul.f32 0.5, %v105_v27  ;;  %v124_v47 = vmul.f32 0.5, %v106_v30 }
  0x31   :  { %vm439_vm2 = vcmp.lt.f32.partialorder %v110_v35, 1.0  ;;  %v125_v49 = vmul.f32 0.5, %v107_v31  ;;  %v127_v50 = vmul.f32 %v121_v43, %v103_v23  ;;  %v128_v51 = vmul.f32 %v122_v44, %v104_v26  ;;  %p312_p6 = pnand %p311_p5, %p305_p2 }
  0x32   :  { %258 = vlog2.f32 %v85_v38  ;;  %v82_v52 = vsub.f32 0.0, %v79_v37  ;;  %vm443_vm3 = vcmp.lt.f32.partialorder %v111_v36, 1.0  ;;  %v129_v54 = vmul.f32 %v123_v46, %v105_v27 }
  0x33   :  { %v238_v55 = vadd.f32 -0.5, %v109_v33  ;;  %vm447_vm4 = vcmp.lt.f32.partialorder %v112_v39, 1.0  ;;  %v130_v57 = vmul.f32 %v124_v47, %v106_v30  ;;  %v239_v58 = vadd.f32 -0.5, %v110_v35 }
  0x34   :  { %v240_v59 = vadd.f32 -0.5, %v111_v36  ;;  %v83_v60 = vmul.f32 %v80_v45, %v80_v45  ;;  %v126_v61 = vmul.f32 0.5, %v108_v32  ;;  %v241_v62 = vadd.f32 -0.5, %v112_v39 }
  0x35   :  { %v139_v63 = vsel %vm435_vm1, %v127_v50, %v238_v55  ;;  %v131_v0 = vmul.f32 %v125_v49, %v107_v31  ;;  %v242_v1 = vadd.f32 -0.5, %v113_v40  ;;  %v140_v2 = vsel %vm439_vm2, %v128_v51, %v239_v58 }
  0x36   :  { %v141_v3 = vsel %vm443_vm3, %v129_v54, %v240_v59  ;;  %vm119_vm5 = vcmp.lt.f32.partialorder %v113_v40, 1.0  ;;  %v146_v4 = vadd.f32 %v140_v2, %v139_v63  ;;  %v142_v5 = vsel %vm447_vm4, %v130_v57, %v241_v62 }
  0x37   :  { %v132_v6 = vmul.f32 %v126_v61, %v108_v32  ;;  %v243_v7 = vadd.f32 -0.5, %v114_v41  ;;  %v84_v9 = vmul.f32 %v83_v60, %v82_v52  ;;  %vm120_vm6 = vcmp.lt.f32.partialorder %v114_v41, 1.0 }
  0x38   :  { %v147_v8 = vadd.f32 %v146_v4, %v141_v3  ;;  %v143_v10 = vsel %vm119_vm5, %v131_v0, %v242_v1 }
  0x39   :  { %v144_v14 = vsel %vm120_vm6, %v132_v6, %v243_v7 }
  0x3a   :  { %v148_v12 = vadd.f32 %v147_v8, %v142_v5 }
  0x3c   :  { %v259_v11 = vpop.eup %258  ;;  %v149_v15 = vadd.f32 %v148_v12, %v143_v10 }
  0x3d   :  { %v87_v13 = vmul.f32 0.6931472, %v259_v11 }
  0x3e   :  { %v150_v17 = vadd.f32 %v149_v15, %v144_v14 }
  0x3f   :  { %v88_v16 = vmul.f32 %v87_v13, %v84_v9 }
  0x41   :  { %157 = vadd.xlane.f32.xlu0 %v88_v16 }
  0x45   :  { %170 = vadd.xlane.f32.xlu0 %v150_v17 }
  0xb7   :  { %v183_v18 = vpop.xlane.xlu1 %182 }
  0xb8   :  { %v184_v19 = vrot.slane %v183_v18, 4 }
  0xba   :  { %v185_v20 = vadd.f32 %v184_v19, %v183_v18 }
  0xbc   :  { %v186_v24 = vrot.slane %v185_v20, 2 }
  0xbe   :  { %v187_v30 = vadd.f32 %v186_v24, %v185_v20 }
  0xc0   :  { %v188_v35 = vrot.slane %v187_v30, 1 }
  0xc2   :  { %v189_v38 = vadd.f32 %v188_v35, %v187_v30 }
  0xce   :  { %v158_v21 = vpop.xlane.xlu0 %157 }
  0xcf   :  { %v159_v22 = vrot.slane %v158_v21, 4 }
  0xd1   :  { %v160_v23 = vadd.f32 %v159_v22, %v158_v21 }
  0xd2   :  { %v171_v25 = vpop.xlane.xlu0 %170 }
  0xd3   :  { %v161_v26 = vrot.slane %v160_v23, 2  ;;  %v172_v27 = vrot.slane %v171_v25, 4 }
  0xd5   :  { %v173_v28 = vadd.f32 %v172_v27, %v171_v25  ;;  %v162_v29 = vadd.f32 %v161_v26, %v160_v23 }
  0xd7   :  { %v174_v31 = vrot.slane %v173_v28, 2  ;;  %v163_v32 = vrot.slane %v162_v29, 1 }
  0xd9   :  { %v175_v33 = vadd.f32 %v174_v31, %v173_v28  ;;  %v164_v34 = vadd.f32 %v163_v32, %v162_v29 }
  0xdb   :  { %244 = vpush %v164_v34  ;;  %v176_v36 = vrot.slane %v175_v33, 1 }
  0xdd   :  { %v177_v37 = vadd.f32 %v176_v36, %v175_v33 }
  0xdf   :  { %246 = vpush %v177_v37 }
  0xe0   :  { %248 = vpush %v189_v38 }
 0x10c   :  { %s245_s15 = spop %244 }
 0x10d   :  { %v166_v39 = vstv %s245_s15 }
 0x10e   :  { %168 = vst.msk [vmem:[#allocation10] sm:$0x1] %vm167_vm7, %v166_v39 }
 0x10f   :  { %315 = shalt.err (!%p312_p6)
}
 0x110   :  { %s316_s24 = scalar_lea.hbm %s508_s2, 16 }
 0x111   :  { %p317_p7 = scmp.ne.s32.totalorder %s508_s2, %s316_s24  ;;  %p320_p8 = scmp.lt.u32.totalorder %s316_s24, %s508_s2 }
 0x113   :  { %p322_p9 = pnand %p320_p8, %p317_p7 }
 0x115   :  { %325 = shalt.err (!%p322_p9)
}
 0x116   :  { %202 = dma.vmem_to_hbm [thread:$0]  %s200_s14, 16, %s508_s2, [#allocation7]  }
 0x117   :  { %s247_s5 = spop %246  ;;  %s326_s7 = scalar_lea.vmem %s210_s17, 16 }
 0x118   :  { %v179_v40 = vstv %s247_s5  ;;  %s249_s6 = spop %248  ;;  %p327_p10 = scmp.ne.s32.totalorder %s210_s17, %s326_s7 }
 0x119   :  { %v191_v41 = vstv %s249_s6  ;;  %180 = vst.msk [vmem:[#allocation11] sm:$0x1] %vm167_vm7, %v179_v40  ;;  %s330_s8 = scalar_lea.vmem %s210_s17, 32  ;;  %p331_p11 = scmp.lt.s32.totalorder %s210_s17, %s210_s17 }
 0x11a   :  { %192 = vst.msk [vmem:[#allocation13] sm:$0x1] %vm167_vm7, %v191_v41  ;;  %p332_p12 = scmp.lt.s32.totalorder %s330_s8, %s326_s7 }
 0x11c   :  { %p333_p13 = por %p332_p12, %p331_p11 }
 0x11e   :  { %p334_p0 = pnand %p333_p13, %p327_p10 }
 0x120   :  { %337 = shalt.err (!%p334_p0)
}
 0x121   :  { %s338_s10 = scalar_lea.hbm %s509_s3, 16 }
 0x122   :  { %p339_p1 = scmp.ne.s32.totalorder %s509_s3, %s338_s10  ;;  %p342_p2 = scmp.lt.u32.totalorder %s338_s10, %s509_s3 }
 0x124   :  { %p344_p3 = pnand %p342_p2, %p339_p1 }
 0x126   :  { %347 = shalt.err (!%p344_p3)
}
 0x127   :  { %212 = dma.vmem_to_hbm [thread:$0]  %s210_s17, 16, %s509_s3, [#allocation12]  }
 0x128   :  { %s348_s15 = scalar_lea.vmem %s472_s19, 16  ;;  %s352_s16 = scalar_lea.vmem %s472_s19, 32 }
 0x129   :  { %p349_p4 = scmp.ne.s32.totalorder %s472_s19, %s348_s15  ;;  %p353_p5 = scmp.lt.s32.totalorder %s472_s19, %s472_s19 }
 0x12a   :  { %p354_p6 = scmp.lt.s32.totalorder %s352_s16, %s348_s15 }
 0x12c   :  { %p355_p7 = por %p354_p6, %p353_p5 }
 0x12e   :  { %p356_p8 = pnand %p355_p7, %p349_p4 }
 0x130   :  { %359 = shalt.err (!%p356_p8)
}
 0x131   :  { %s360_s21 = scalar_lea.hbm %s510_s4, 16 }
 0x132   :  { %p361_p9 = scmp.ne.s32.totalorder %s510_s4, %s360_s21  ;;  %p364_p10 = scmp.lt.u32.totalorder %s360_s21, %s510_s4 }
 0x134   :  { %p366_p11 = pnand %p364_p10, %p361_p9 }
 0x136   :  { %369 = shalt.err (!%p366_p11)
}
 0x137   :  { %222 = dma.vmem_to_hbm [thread:$0]  %s472_s19, 16, %s510_s4, [#allocation12]  }
 0x138   :  { %374 = dma.done.wait [#allocation7], 16  }
 0x139   :  { %375 = vsyncadd [#allocation7], 4294967280 }
 0x13a   :  { %376 = dma.done.wait [#allocation12], 32  }
 0x13b   :  { %377 = vsyncadd [#allocation12], 4294967264 }
 0x13c   :  { %232 = vsyncpa [#allocation6], 1 }
 0x13d   :  { %233 = vsyncpa [#allocation9], 1 }
 0x13e   :  { %234 = vsyncpa [#allocation7], 1 }
 0x13f   :  { %235 = vsyncpa [#allocation12], 1 }

</bundles_post_ra>
